<compile_context>
chip_gen: v6e
topology: v6e:2x2x1
jax: 0.10.0
libtpu: 0.0.40
codegen_flags: <defaults>
</compile_context>

<pallas_src>
import jax
import jax.numpy as jnp
from jax.experimental import pallas as pl
from jax.experimental.pallas import tpu as pltpu


# ---------------------------------------------------------------------------
# Kernel 1: single GRU time step, gridded over layers (weights streamed per layer).
# ---------------------------------------------------------------------------
def _gru_step_kernel(x_ref, h0_ref, wi_ref, wh_ref, brz_ref, bin_ref, bhn_ref,
                     hout_ref, x_scr):
    H = h0_ref.shape[-1]

    @pl.when(pl.program_id(0) == 0)
    def _():
        # F.relu on the gathered embedding; elementwise math in f32, carry in bf16.
        x_scr[...] = jnp.maximum(x_ref[...].astype(jnp.float32), 0.0).astype(jnp.bfloat16)

    x = x_scr[...]                                          # [B, H]  bf16
    h = h0_ref[0]                                           # [B, H]  f32

    # Two fused MXU pushes per layer (gates r|z|n concatenated on the output axis).
    gi = jnp.dot(x, wi_ref[0], preferred_element_type=jnp.float32)              # [B, 3H]
    gh = jnp.dot(h.astype(jnp.bfloat16), wh_ref[0],
                 preferred_element_type=jnp.float32)                            # [B, 3H]

    # Gate order (r, z, n) matches torch.nn.GRU; r/z biases pre-fused host-side.
    rz = jax.nn.sigmoid(gi[:, :2 * H] + gh[:, :2 * H] + brz_ref[0])
    r = rz[:, :H]
    z = rz[:, H:]
    n = jnp.tanh(gi[:, 2 * H:] + bin_ref[0] + r * (gh[:, 2 * H:] + bhn_ref[0]))
    h_new = (1.0 - z) * n + z * h                           # [B, H]  f32

    hout_ref[0] = h_new
    x_scr[...] = h_new.astype(jnp.bfloat16)                 # input to the next layer


# ---------------------------------------------------------------------------
# Kernel 2: output Linear, tiled & pipelined over the vocab axis.
# ---------------------------------------------------------------------------
def _proj_kernel(h_ref, w_ref, b_ref, out_ref):
    x = h_ref[0].astype(jnp.bfloat16)                       # last GRU layer, cast in-kernel
    out_ref[...] = jnp.dot(x, w_ref[...],
                           preferred_element_type=jnp.float32) + b_ref[...]


# ---------------------------------------------------------------------------
# Per-generation sizing helpers.
# ---------------------------------------------------------------------------
def _vmem_budget_bytes():
    """~3/4 of physical VMEM: 96 MiB on v5e/v6e (128 MiB), 48 MiB on v7x (64 MiB)."""
    cap = None
    try:
        info = pltpu.get_tpu_info()
        for name in ("vmem_capacity_bytes", "vmem_size_bytes", "vmem_bytes"):
            cap = getattr(info, name, None)
            if cap:
                break
    except Exception:
        cap = None
    if not cap:
        cap = 64 * 1024 * 1024          # conservative default (v7x-sized VMEM)
    return (3 * int(cap)) // 4


def _pick_vocab_tile(V, H, B, budget_bytes):
    """Largest lane-dense vocab tile that fits the per-generation VMEM budget,
    preferring >= 4 tiles (2 per v7x TensorCore, each with its own pipeline)."""
    def tile_bytes(tv):
        # double-buffered bf16 weight tile + f32 out tile + bias + resident activation
        return 2 * (H * tv * 2) + 2 * (B * tv * 4) + 2 * (tv * 4) + 2 * (B * H * 4)

    fitting = [tv for tv in (8192, 4096, 2048, 1024, 512, 256, 128)
               if V % tv == 0 and tile_bytes(tv) <= budget_bytes]
    if not fitting:
        return 128 if V % 128 == 0 else V
    for min_tiles in (4, 2, 1):
        for tv in fitting:              # largest first
            if V // tv >= min_tiles:
                return tv
    return fitting[-1]


# ---------------------------------------------------------------------------
# Forward wrapper.
# ---------------------------------------------------------------------------
def decoder_rnn_forward(ids, hidden, params):
    """ids: int32 [B]; hidden: f32 [L, B, H] -> (logits f32 [B, V], hidden f32 [L, B, H])."""
    B = ids.shape[0]
    L, _, H = hidden.shape
    V = params["w_out"].shape[1]

    vmem_limit = _vmem_budget_bytes()

    # Embedding gather done by XLA outside the kernel: only B*H bytes enter VMEM.
    x_emb = jnp.take(params["emb"], ids.astype(jnp.int32), axis=0)       # [B, H] bf16

    # Host-side bias fusion for the r/z gates; n-gate biases stay separate.
    b_rz = params["b_i"][:, :, :2 * H] + params["b_h"][:, :, :2 * H]     # [L, 1, 2H]
    b_in = params["b_i"][:, :, 2 * H:]                                   # [L, 1, H]
    b_hn = params["b_h"][:, :, 2 * H:]                                   # [L, 1, H]

    hout = pl.pallas_call(
        _gru_step_kernel,
        out_shape=jax.ShapeDtypeStruct((L, B, H), jnp.float32),
        grid_spec=pltpu.PrefetchScalarGridSpec(
            num_scalar_prefetch=0,
            grid=(L,),
            in_specs=[
                pl.BlockSpec((B, H), lambda l: (0, 0)),            # embedding (resident)
                pl.BlockSpec((1, B, H), lambda l: (l, 0, 0)),      # h0 per layer
                pl.BlockSpec((1, H, 3 * H), lambda l: (l, 0, 0)),  # w_i streamed per layer
                pl.BlockSpec((1, H, 3 * H), lambda l: (l, 0, 0)),  # w_h streamed per layer
                pl.BlockSpec((1, 1, 2 * H), lambda l: (l, 0, 0)),  # fused r/z bias
                pl.BlockSpec((1, 1, H), lambda l: (l, 0, 0)),      # b_in
                pl.BlockSpec((1, 1, H), lambda l: (l, 0, 0)),      # b_hn
            ],
            out_specs=pl.BlockSpec((1, B, H), lambda l: (l, 0, 0)),
            scratch_shapes=[pltpu.VMEM((B, H), jnp.bfloat16)],     # layer-input carry
        ),
        # hidden (input 1) aliases new-hidden (output 0): each layer block is read
        # before its aliased output block is written back, so no copy is needed.
        input_output_aliases={1: 0},
        compiler_params=pltpu.CompilerParams(
            dimension_semantics=("arbitrary",),                    # layers are sequential
            vmem_limit_bytes=vmem_limit,
        ),
    )(x_emb, hidden, params["w_i"], params["w_h"], b_rz, b_in, b_hn)

    # Pad V to a multiple of 128 so projection tiles stay lane-dense / stores unmasked.
    Vp = ((V + 127) // 128) * 128
    w_out, b_out = params["w_out"], params["b_out"]
    if Vp != V:
        w_out = jnp.pad(w_out, ((0, 0), (0, Vp - V)))
        b_out = jnp.pad(b_out, ((0, 0), (0, Vp - V)))

    TV = _pick_vocab_tile(Vp, H, B, vmem_limit)
    last = L - 1
    logits = pl.pallas_call(
        _proj_kernel,
        out_shape=jax.ShapeDtypeStruct((B, Vp), jnp.float32),
        grid_spec=pltpu.PrefetchScalarGridSpec(
            num_scalar_prefetch=0,
            grid=(Vp // TV,),
            in_specs=[
                pl.BlockSpec((1, B, H), lambda j: (last, 0, 0)),   # last GRU layer (resident)
                pl.BlockSpec((H, TV), lambda j: (0, j)),           # weight tiles streamed
                pl.BlockSpec((1, TV), lambda j: (0, j)),
            ],
            out_specs=pl.BlockSpec((B, TV), lambda j: (0, j)),
        ),
        compiler_params=pltpu.CompilerParams(
            dimension_semantics=("parallel",),        # vocab tiles shard across v7x's 2 TCs
            vmem_limit_bytes=vmem_limit,
        ),
    )(hout, w_out, b_out)
    if Vp != V:
        logits = logits[:, :V]

    # TODO(synk): for autoregressive decode, fuse T steps into one pallas_call with GRU
    # weights pinned in VMEM scratch (fits on 128 MiB v5e/v6e; on 64 MiB v7x keep per-layer
    # streaming for large H), and tile the 3H gate axis once H >= 2048 on v7x.
    return logits, hout


# ---------------------------------------------------------------------------
# Params / reference / driver.
# ---------------------------------------------------------------------------
def init_params(key, hidden_size, tgt_vocab_size, num_layers):
    """Weights pre-transposed ([in, out]) and gate-fused (r|z|n) on the output axis."""
    H, V, L = hidden_size, tgt_vocab_size, num_layers
    ks = jax.random.split(key, 8)
    s = 1.0 / jnp.sqrt(jnp.float32(H))

    def mat(k, shape, dtype=jnp.bfloat16):
        return ((jax.random.uniform(k, shape, jnp.float32) * 2.0 - 1.0) * s).astype(dtype)

    return {
        "emb":   jax.random.normal(ks[0], (V, H), jnp.float32).astype(jnp.bfloat16),
        "w_i":   mat(ks[1], (L, H, 3 * H)),
        "w_h":   mat(ks[2], (L, H, 3 * H)),
        "b_i":   mat(ks[3], (L, 1, 3 * H), jnp.float32),
        "b_h":   mat(ks[4], (L, 1, 3 * H), jnp.float32),
        "w_out": mat(ks[5], (H, V)),
        "b_out": mat(ks[6], (1, V), jnp.float32),
    }


def reference_forward(ids, hidden, p):
    """Pure-JAX reference mirroring torch GRU semantics and the kernel's bf16 weight numerics."""
    H = hidden.shape[2]
    x = jnp.maximum(p["emb"][ids].astype(jnp.float32), 0.0).astype(jnp.bfloat16)
    h_out = []
    for l in range(hidden.shape[0]):
        h = hidden[l]
        gi = jnp.dot(x, p["w_i"][l], preferred_element_type=jnp.float32) + p["b_i"][l]
        gh = jnp.dot(h.astype(jnp.bfloat16), p["w_h"][l],
                     preferred_element_type=jnp.float32) + p["b_h"][l]
        r = jax.nn.sigmoid(gi[:, 0:H] + gh[:, 0:H])
        z = jax.nn.sigmoid(gi[:, H:2 * H] + gh[:, H:2 * H])
        n = jnp.tanh(gi[:, 2 * H:3 * H] + r * gh[:, 2 * H:3 * H])
        h = (1.0 - z) * n + z * h
        h_out.append(h)
        x = h.astype(jnp.bfloat16)
    logits = jnp.dot(x, p["w_out"], preferred_element_type=jnp.float32) + p["b_out"]
    return logits, jnp.stack(h_out)


if __name__ == "__main__":
    # Small but lane-dense shapes (multiples of 128 on the lane axes).
    hidden_size = 128
    tgt_vocab_size = 256
    num_layers = 2
    batch = 8

    key = jax.random.PRNGKey(0)
    k_ids, k_h, k_p = jax.random.split(key, 3)

    ids = jax.random.randint(k_ids, (batch,), 0, tgt_vocab_size, dtype=jnp.int32)
    hidden = jax.random.normal(k_h, (num_layers, batch, hidden_size), jnp.float32)
    params = init_params(k_p, hidden_size, tgt_vocab_size, num_layers)

    # Reference first (the kernel aliases + the jit donates the hidden buffer).
    ref_logits, ref_hidden = reference_forward(ids, hidden, params)
    ref_logits, ref_hidden = jax.block_until_ready((ref_logits, ref_hidden))

    # Donate hidden so input_output_aliases translates into a true in-place update.
    fwd = jax.jit(decoder_rnn_forward, donate_argnums=(1,))
    logits, new_hidden = fwd(ids, hidden, params)
    jax.block_until_ready((logits, new_hidden))

    assert jnp.allclose(logits, ref_logits, atol=1e-2, rtol=1e-2)
    assert jnp.allclose(new_hidden, ref_hidden, atol=1e-2, rtol=1e-2)

    print("KERNEL_OK")
</pallas_src>

<mosaic_0001>
module attributes {stable_mosaic.version = 11 : i64} {
  func.func @_proj_kernel(%arg0: i32, %arg1: memref<1x8x128xf32, #tpu.memory_space<vmem>>, %arg2: memref<128x128xbf16, #tpu.memory_space<vmem>>, %arg3: memref<1x128xf32, #tpu.memory_space<vmem>>, %arg4: memref<8x128xf32, #tpu.memory_space<vmem>>) attributes {dimension_semantics = [#tpu.dimension_semantics<parallel>], iteration_bounds = array<i64: 2>, scalar_prefetch = 0 : i64, scratch_operands = 0 : i64, tpu.core_type = #tpu.core_type<tc>, window_params = [{transform_indices = @transform_0, window_bounds = array<i64: 1, 8, 128>}, {transform_indices = @transform_1, window_bounds = array<i64: 128, 128>}, {transform_indices = @transform_2, window_bounds = array<i64: 1, 128>}, {transform_indices = @transform_3, window_bounds = array<i64: 8, 128>}]} {
    %c0 = arith.constant 0 : index
    %c0_0 = arith.constant 0 : index
    %c0_1 = arith.constant 0 : index
    %0 = vector.load %arg1[%c0, %c0_0, %c0_1] : memref<1x8x128xf32, #tpu.memory_space<vmem>>, vector<1x8x128xf32>
    %1 = vector.shape_cast %0 : vector<1x8x128xf32> to vector<8x128xf32>
    %2 = arith.truncf %1 : vector<8x128xf32> to vector<8x128xbf16>
    %c0_2 = arith.constant 0 : index
    %c0_3 = arith.constant 0 : index
    %3 = vector.load %arg2[%c0_2, %c0_3] : memref<128x128xbf16, #tpu.memory_space<vmem>>, vector<128x128xbf16>
    %cst = arith.constant dense<0.000000e+00> : vector<8x128xf32>
    %4 = tpu.matmul %2, %3, %cst {dimension_numbers = #tpu.dot_dimension_numbers<[1], [0], [0], [1], [0, 0, 1, 1], [], []>} : vector<8x128xbf16>, vector<128x128xbf16>, vector<8x128xf32> -> vector<8x128xf32>
    %c0_4 = arith.constant 0 : index
    %c0_5 = arith.constant 0 : index
    %5 = vector.load %arg3[%c0_4, %c0_5] : memref<1x128xf32, #tpu.memory_space<vmem>>, vector<1x128xf32>
    %6 = vector.broadcast %5 : vector<1x128xf32> to vector<8x128xf32>
    %7 = arith.addf %4, %6 : vector<8x128xf32>
    %c0_6 = arith.constant 0 : index
    %c0_7 = arith.constant 0 : index
    %8 = vector.load %arg4[%c0_6, %c0_7] : memref<8x128xf32, #tpu.memory_space<vmem>>, vector<8x128xf32>
    tpu.vector_store %arg4[%c0_6, %c0_7], %7 {strides = array<i32>} : memref<8x128xf32, #tpu.memory_space<vmem>>, vector<8x128xf32>,
    return
  }
  func.func @transform_0(%arg0: i32) -> (i32, i32, i32) {
    %c1_i32 = arith.constant 1 : i32
    %c0_i32 = arith.constant 0 : i32
    %c0_i32_0 = arith.constant 0 : i32
    %c0_i32_1 = arith.constant 0 : i32
    return %c1_i32, %c0_i32, %c0_i32_0 : i32, i32, i32
  }
  func.func @transform_1(%arg0: i32) -> (i32, i32) {
    %c0_i32 = arith.constant 0 : i32
    %c0_i32_0 = arith.constant 0 : i32
    return %c0_i32, %arg0 : i32, i32
  }
  func.func @transform_2(%arg0: i32) -> (i32, i32) {
    %c0_i32 = arith.constant 0 : i32
    %c0_i32_0 = arith.constant 0 : i32
    return %c0_i32, %arg0 : i32, i32
  }
  func.func @transform_3(%arg0: i32) -> (i32, i32) {
    %c0_i32 = arith.constant 0 : i32
    %c0_i32_0 = arith.constant 0 : i32
    return %c0_i32, %arg0 : i32, i32
  }
}

module attributes {stable_mosaic.version = 11 : i64} {
  func.func @_gru_step_kernel(%arg0: i32, %arg1: memref<8x128xbf16, #tpu.memory_space<vmem>>, %arg2: memref<1x8x128xf32, #tpu.memory_space<vmem>>, %arg3: memref<1x128x384xbf16, #tpu.memory_space<vmem>>, %arg4: memref<1x128x384xbf16, #tpu.memory_space<vmem>>, %arg5: memref<1x1x256xf32, #tpu.memory_space<vmem>>, %arg6: memref<1x1x128xf32, #tpu.memory_space<vmem>>, %arg7: memref<1x1x128xf32, #tpu.memory_space<vmem>>, %arg8: memref<1x8x128xf32, #tpu.memory_space<vmem>>, %arg9: memref<8x128xbf16, #tpu.memory_space<vmem>>) attributes {dimension_semantics = [#tpu.dimension_semantics<arbitrary>], iteration_bounds = array<i64: 2>, scalar_prefetch = 0 : i64, scratch_operands = 1 : i64, tpu.core_type = #tpu.core_type<tc>, window_params = [{pipeline_mode = #tpu.pipeline_mode<synchronous>, transform_indices = @transform_0, window_bounds = array<i64: 8, 128>}, {transform_indices = @transform_1, window_bounds = array<i64: 1, 8, 128>}, {transform_indices = @transform_2, window_bounds = array<i64: 1, 128, 384>}, {transform_indices = @transform_3, window_bounds = array<i64: 1, 128, 384>}, {transform_indices = @transform_4, window_bounds = array<i64: 1, 1, 256>}, {transform_indices = @transform_5, window_bounds = array<i64: 1, 1, 128>}, {transform_indices = @transform_6, window_bounds = array<i64: 1, 1, 128>}, {transform_indices = @transform_7, window_bounds = array<i64: 1, 8, 128>}]} {
    %c0_i32 = arith.constant 0 : i32
    %0 = arith.cmpi eq, %arg0, %c0_i32 : i32
    %1 = arith.extui %0 : i1 to i32
    %c0_i32_0 = arith.constant 0 : i32
    %2 = arith.cmpi ne, %1, %c0_i32_0 : i32
    scf.if %2 {
      %c0_28 = arith.constant 0 : index
      %c0_29 = arith.constant 0 : index
      %50 = vector.load %arg1[%c0_28, %c0_29] : memref<8x128xbf16, #tpu.memory_space<vmem>>, vector<8x128xbf16>
      %51 = arith.extf %50 : vector<8x128xbf16> to vector<8x128xf32>
      %cst_30 = arith.constant 0.000000e+00 : f32
      %52 = vector.broadcast %cst_30 : f32 to vector<8x128xf32>
      %53 = arith.maximumf %51, %52 : vector<8x128xf32>
      %54 = arith.truncf %53 : vector<8x128xf32> to vector<8x128xbf16>
      %c0_31 = arith.constant 0 : index
      %c0_32 = arith.constant 0 : index
      %55 = vector.load %arg9[%c0_31, %c0_32] : memref<8x128xbf16, #tpu.memory_space<vmem>>, vector<8x128xbf16>
      tpu.vector_store %arg9[%c0_31, %c0_32], %54 {strides = array<i32>} : memref<8x128xbf16, #tpu.memory_space<vmem>>, vector<8x128xbf16>,
    } else {
    }
    %c0 = arith.constant 0 : index
    %c0_1 = arith.constant 0 : index
    %3 = vector.load %arg9[%c0, %c0_1] : memref<8x128xbf16, #tpu.memory_space<vmem>>, vector<8x128xbf16>
    %c0_2 = arith.constant 0 : index
    %c0_3 = arith.constant 0 : index
    %c0_4 = arith.constant 0 : index
    %4 = vector.load %arg2[%c0_2, %c0_3, %c0_4] : memref<1x8x128xf32, #tpu.memory_space<vmem>>, vector<1x8x128xf32>
    %5 = vector.shape_cast %4 : vector<1x8x128xf32> to vector<8x128xf32>
    %c0_5 = arith.constant 0 : index
    %c0_6 = arith.constant 0 : index
    %c0_7 = arith.constant 0 : index
    %6 = vector.load %arg3[%c0_5, %c0_6, %c0_7] : memref<1x128x384xbf16, #tpu.memory_space<vmem>>, vector<1x128x384xbf16>
    %7 = vector.shape_cast %6 : vector<1x128x384xbf16> to vector<128x384xbf16>
    %cst = arith.constant dense<0.000000e+00> : vector<8x384xf32>
    %8 = tpu.matmul %3, %7, %cst {dimension_numbers = #tpu.dot_dimension_numbers<[1], [0], [0], [1], [0, 0, 1, 1], [], []>} : vector<8x128xbf16>, vector<128x384xbf16>, vector<8x384xf32> -> vector<8x384xf32>
    %9 = arith.truncf %5 : vector<8x128xf32> to vector<8x128xbf16>
    %c0_8 = arith.constant 0 : index
    %c0_9 = arith.constant 0 : index
    %c0_10 = arith.constant 0 : index
    %10 = vector.load %arg4[%c0_8, %c0_9, %c0_10] : memref<1x128x384xbf16, #tpu.memory_space<vmem>>, vector<1x128x384xbf16>
    %11 = vector.shape_cast %10 : vector<1x128x384xbf16> to vector<128x384xbf16>
    %cst_11 = arith.constant dense<0.000000e+00> : vector<8x384xf32>
    %12 = tpu.matmul %9, %11, %cst_11 {dimension_numbers = #tpu.dot_dimension_numbers<[1], [0], [0], [1], [0, 0, 1, 1], [], []>} : vector<8x128xbf16>, vector<128x384xbf16>, vector<8x384xf32> -> vector<8x384xf32>
    %13 = vector.extract_strided_slice %8 {offsets = [0, 0], sizes = [8, 256], strides = [1, 1]} : vector<8x384xf32> to vector<8x256xf32>
    %14 = vector.extract_strided_slice %12 {offsets = [0, 0], sizes = [8, 256], strides = [1, 1]} : vector<8x384xf32> to vector<8x256xf32>
    %15 = arith.addf %13, %14 : vector<8x256xf32>
    %c0_12 = arith.constant 0 : index
    %c0_13 = arith.constant 0 : index
    %c0_14 = arith.constant 0 : index
    %16 = vector.load %arg5[%c0_12, %c0_13, %c0_14] : memref<1x1x256xf32, #tpu.memory_space<vmem>>, vector<1x1x256xf32>
    %17 = vector.shape_cast %16 : vector<1x1x256xf32> to vector<1x256xf32>
    %18 = vector.broadcast %17 : vector<1x256xf32> to vector<8x256xf32>
    %19 = arith.addf %15, %18 : vector<8x256xf32>
    %20 = arith.negf %19 : vector<8x256xf32>
    %21 = math.exp %20 : vector<8x256xf32>
    %cst_15 = arith.constant 1.000000e+00 : f32
    %22 = vector.broadcast %cst_15 : f32 to vector<8x256xf32>
    %23 = arith.addf %22, %21 : vector<8x256xf32>
    %24 = arith.divf %22, %23 : vector<8x256xf32>
    %25 = vector.extract_strided_slice %24 {offsets = [0, 0], sizes = [8, 128], strides = [1, 1]} : vector<8x256xf32> to vector<8x128xf32>
    %26 = vector.extract_strided_slice %24 {offsets = [0, 128], sizes = [8, 128], strides = [1, 1]} : vector<8x256xf32> to vector<8x128xf32>
    %27 = vector.extract_strided_slice %8 {offsets = [0, 256], sizes = [8, 128], strides = [1, 1]} : vector<8x384xf32> to vector<8x128xf32>
    %c0_16 = arith.constant 0 : index
    %c0_17 = arith.constant 0 : index
    %c0_18 = arith.constant 0 : index
    %28 = vector.load %arg6[%c0_16, %c0_17, %c0_18] : memref<1x1x128xf32, #tpu.memory_space<vmem>>, vector<1x1x128xf32>
    %29 = vector.shape_cast %28 : vector<1x1x128xf32> to vector<1x128xf32>
    %30 = vector.broadcast %29 : vector<1x128xf32> to vector<8x128xf32>
    %31 = arith.addf %27, %30 : vector<8x128xf32>
    %32 = vector.extract_strided_slice %12 {offsets = [0, 256], sizes = [8, 128], strides = [1, 1]} : vector<8x384xf32> to vector<8x128xf32>
    %c0_19 = arith.constant 0 : index
    %c0_20 = arith.constant 0 : index
    %c0_21 = arith.constant 0 : index
    %33 = vector.load %arg7[%c0_19, %c0_20, %c0_21] : memref<1x1x128xf32, #tpu.memory_space<vmem>>, vector<1x1x128xf32>
    %34 = vector.shape_cast %33 : vector<1x1x128xf32> to vector<1x128xf32>
    %35 = vector.broadcast %34 : vector<1x128xf32> to vector<8x128xf32>
    %36 = arith.addf %32, %35 : vector<8x128xf32>
    %37 = arith.mulf %25, %36 : vector<8x128xf32>
    %38 = arith.addf %31, %37 : vector<8x128xf32>
    %39 = math.tanh %38 : vector<8x128xf32>
    %cst_22 = arith.constant 1.000000e+00 : f32
    %40 = vector.broadcast %cst_22 : f32 to vector<8x128xf32>
    %41 = arith.subf %40, %26 : vector<8x128xf32>
    %42 = arith.mulf %41, %39 : vector<8x128xf32>
    %43 = arith.mulf %26, %5 : vector<8x128xf32>
    %44 = arith.addf %42, %43 : vector<8x128xf32>
    %c0_23 = arith.constant 0 : index
    %c0_24 = arith.constant 0 : index
    %c0_25 = arith.constant 0 : index
    %45 = vector.load %arg8[%c0_23, %c0_24, %c0_25] : memref<1x8x128xf32, #tpu.memory_space<vmem>>, vector<1x8x128xf32>
    %46 = vector.shape_cast %45 : vector<1x8x128xf32> to vector<8x128xf32>
    %47 = vector.shape_cast %44 : vector<8x128xf32> to vector<1x8x128xf32>
    tpu.vector_store %arg8[%c0_23, %c0_24, %c0_25], %47 {strides = array<i32>} : memref<1x8x128xf32, #tpu.memory_space<vmem>>, vector<1x8x128xf32>,
    %48 = arith.truncf %44 : vector<8x128xf32> to vector<8x128xbf16>
    %c0_26 = arith.constant 0 : index
    %c0_27 = arith.constant 0 : index
    %49 = vector.load %arg9[%c0_26, %c0_27] : memref<8x128xbf16, #tpu.memory_space<vmem>>, vector<8x128xbf16>
    tpu.vector_store %arg9[%c0_26, %c0_27], %48 {strides = array<i32>} : memref<8x128xbf16, #tpu.memory_space<vmem>>, vector<8x128xbf16>,
    return
  }
  func.func @transform_0(%arg0: i32) -> (i32, i32) {
    %c0_i32 = arith.constant 0 : i32
    %c0_i32_0 = arith.constant 0 : i32
    %c0_i32_1 = arith.constant 0 : i32
    return %c0_i32, %c0_i32_0 : i32, i32
  }
  func.func @transform_1(%arg0: i32) -> (i32, i32, i32) {
    %c0_i32 = arith.constant 0 : i32
    %c0_i32_0 = arith.constant 0 : i32
    %c0_i32_1 = arith.constant 0 : i32
    return %arg0, %c0_i32, %c0_i32_0 : i32, i32, i32
  }
  func.func @transform_2(%arg0: i32) -> (i32, i32, i32) {
    %c0_i32 = arith.constant 0 : i32
    %c0_i32_0 = arith.constant 0 : i32
    %c0_i32_1 = arith.constant 0 : i32
    return %arg0, %c0_i32, %c0_i32_0 : i32, i32, i32
  }
  func.func @transform_3(%arg0: i32) -> (i32, i32, i32) {
    %c0_i32 = arith.constant 0 : i32
    %c0_i32_0 = arith.constant 0 : i32
    %c0_i32_1 = arith.constant 0 : i32
    return %arg0, %c0_i32, %c0_i32_0 : i32, i32, i32
  }
  func.func @transform_4(%arg0: i32) -> (i32, i32, i32) {
    %c0_i32 = arith.constant 0 : i32
    %c0_i32_0 = arith.constant 0 : i32
    %c0_i32_1 = arith.constant 0 : i32
    return %arg0, %c0_i32, %c0_i32_0 : i32, i32, i32
  }
  func.func @transform_5(%arg0: i32) -> (i32, i32, i32) {
    %c0_i32 = arith.constant 0 : i32
    %c0_i32_0 = arith.constant 0 : i32
    %c0_i32_1 = arith.constant 0 : i32
    return %arg0, %c0_i32, %c0_i32_0 : i32, i32, i32
  }
  func.func @transform_6(%arg0: i32) -> (i32, i32, i32) {
    %c0_i32 = arith.constant 0 : i32
    %c0_i32_0 = arith.constant 0 : i32
    %c0_i32_1 = arith.constant 0 : i32
    return %arg0, %c0_i32, %c0_i32_0 : i32, i32, i32
  }
  func.func @transform_7(%arg0: i32) -> (i32, i32, i32) {
    %c0_i32 = arith.constant 0 : i32
    %c0_i32_0 = arith.constant 0 : i32
    %c0_i32_1 = arith.constant 0 : i32
    return %arg0, %c0_i32, %c0_i32_0 : i32, i32, i32
  }
}

</mosaic_0001>

<bundles_post_ra>
// kernel: decoder_rnn_forward.3
= control target key start
LH: loop header
LB: loop body
LE: loop exit
PB: predicated region body
PF: predicated region fallthrough
CT: control target
= control target key end

     0   :  { %8 = vsyncpa [#allocation4], 0  ;;  %s822_s0 = inlined_call_operand.vmem [shape: f32[2,8,128], index: 0, kind: input, shape index: {}]   ;;  %s823_s1 = inlined_call_operand.vmem [shape: bf16[128,256], index: 1, kind: input, shape index: {}]   ;;  %s824_s2 = inlined_call_operand.vmem [shape: f32[1,256], index: 2, kind: input, shape index: {}]   ;;  %s825_s3 = inlined_call_operand.hbm [shape: f32[8,256], index: 3, kind: output, shape index: {}]  }
   0x1   :  { %10 = vsyncpa [#allocation4 + $0x1], 0  ;;  %s687_s12 = smov 0   ;;  %s689_s13 = smov 0  }
   0x2   :  { %s691_s14 = smov 0   ;;  %s693_s15 = smov 0  }
   0x3 LB: > { %s708_s16 = sadd.s32 4294967295, %s662_s15   ;;  %s501_s17 = sadd.s32 4294967294, %s662_s15   ;;  %s662_s15 = sphi %s693_s15, %s831_s15   ;;  %s658_s14 = sphi %s691_s14, %s830_s14   ;;  %s654_s13 = sphi %s689_s13, %s829_s13   ;;  %s650_s12 = sphi %s687_s12, %s828_s12  }
   0x4   : > { %s712_s18 = sadd.s32 1, %s662_s15   ;;  %s44_s19 = sadd.s32 1, %s658_s14 }
   0x5   : > { %s41_s20 = ssub.s32 %s662_s15, %s712_s18  ;;  %p51_p0 = scmp.ne.s32.totalorder %s658_s14, %s654_s13 }
   0x6   : > { %p42_p1 = scmp.eq.s32.totalorder %s41_s20, 0  ;;  %p52_p2 = scmp.eq.s32.totalorder %s662_s15, 0 }
   0x7   : > { %p107_p3 = scmp.eq.s32.totalorder %s708_s16, 1  ;;  %p112_p4 = scmp.ne.s32.totalorder %s654_s13, %s650_s12 }
   0x8   : > { %s724_s21 = scalar_select %p42_p1, %s658_s14, %s44_s19  }
   0x9   : > { %p53_p5 = por %p52_p2, %p51_p0  ;;  %p726_p6 = por %p107_p3, %p51_p0 }
   0xa   : > { %p113_p7 = scmp.eq.s32.totalorder %s501_s17, 1  ;;  %p504_p9 = scmp.ge.s32.totalorder %s662_s15, 2 }
   0xc   : > { %p730_p8 = por %p113_p7, %p112_p4  ;;  %133 = sbr.rel (%p504_p9) target bundleno = 31 (0x1f), region = 20 }
  0x11   : > { %136 = sbr.rel (!%p53_p5) target bundleno = 31 (0x1f), region = 24  ;;  %s138_s24 = sand.u32 (%p53_p5), 1, %s658_s14  }
  0x12   : > { %s506_s25 = sshll.u32 (%p53_p5), %s662_s15, 2  ;;  %s505_s26 = sshll.u32 (%p53_p5), %s138_s24, 6 }
  0x13   : > { %s742_s29 = scalar_lea.vmem (%p53_p5), %s823_s1, %s506_s25  ;;  %s140_s30 = scalar_lea.vmem (%p53_p5), [#allocation2], %s505_s26 }
  0x14   : > { %v159_v0 = vld [vmem:[%s742_s29] sm:$0xf] (%p53_p5)  ;;  %v161_v1 = vld [vmem:[%s742_s29 + $0x8] sm:$0xf] (%p53_p5)  ;;  %v163_v2 = vld [vmem:[%s742_s29 + $0x10] sm:$0xf] (%p53_p5) }
  0x15   : > { %160 = vst [vmem:[%s140_s30] sm:$0xf] (%p53_p5), %v159_v0  ;;  %162 = vst [vmem:[%s140_s30 + $0x4] sm:$0xf] (%p53_p5), %v161_v1  ;;  %v165_v3 = vld [vmem:[%s742_s29 + $0x18] sm:$0xf] (%p53_p5) }
  0x16   : > { %v167_v4 = vld [vmem:[%s742_s29 + $0x20] sm:$0xf]  ;;  %164 = vst [vmem:[%s140_s30 + $0x8] sm:$0xf] %v163_v2  ;;  %166 = vst [vmem:[%s140_s30 + $0xc] sm:$0xf] %v165_v3 }
  0x17   : > { %168 = vst [vmem:[%s140_s30 + $0x10] sm:$0xf] %v167_v4  ;;  %v169_v5 = vld [vmem:[%s742_s29 + $0x28] sm:$0xf]  ;;  %v171_v6 = vld [vmem:[%s742_s29 + $0x30] sm:$0xf] }
  0x18   : > { %v173_v7 = vld [vmem:[%s742_s29 + $0x38] sm:$0xf]  ;;  %170 = vst [vmem:[%s140_s30 + $0x14] sm:$0xf] %v169_v5  ;;  %172 = vst [vmem:[%s140_s30 + $0x18] sm:$0xf] %v171_v6 }
  0x19   : > { %174 = vst [vmem:[%s140_s30 + $0x1c] sm:$0xf] %v173_v7  ;;  %v175_v8 = vld [vmem:[%s742_s29 + $0x40] sm:$0xf]  ;;  %v177_v9 = vld [vmem:[%s742_s29 + $0x48] sm:$0xf] }
  0x1a   : > { %v179_v10 = vld [vmem:[%s742_s29 + $0x50] sm:$0xf]  ;;  %176 = vst [vmem:[%s140_s30 + $0x20] sm:$0xf] %v175_v8  ;;  %178 = vst [vmem:[%s140_s30 + $0x24] sm:$0xf] %v177_v9 }
  0x1b   : > { %180 = vst [vmem:[%s140_s30 + $0x28] sm:$0xf] %v179_v10  ;;  %v181_v11 = vld [vmem:[%s742_s29 + $0x58] sm:$0xf]  ;;  %v183_v12 = vld [vmem:[%s742_s29 + $0x60] sm:$0xf] }
  0x1c   : > { %v185_v13 = vld [vmem:[%s742_s29 + $0x68] sm:$0xf]  ;;  %182 = vst [vmem:[%s140_s30 + $0x2c] sm:$0xf] %v181_v11  ;;  %184 = vst [vmem:[%s140_s30 + $0x30] sm:$0xf] %v183_v12 }
  0x1d   : > { %186 = vst [vmem:[%s140_s30 + $0x34] sm:$0xf] %v185_v13  ;;  %v187_v14 = vld [vmem:[%s742_s29 + $0x70] sm:$0xf]  ;;  %v189_v15 = vld [vmem:[%s742_s29 + $0x78] sm:$0xf] }
  0x1e   : > { %188 = vst [vmem:[%s140_s30 + $0x38] sm:$0xf] %v187_v14  ;;  %190 = vst [vmem:[%s140_s30 + $0x3c] sm:$0xf] %v189_v15 }
  0x1f PF: > { %p507_p10 = scmp.ge.s32.totalorder %s662_s15, 1  ;;  %p251_p11 = scmp.lt.s32.totalorder %s662_s15, 3 }
  0x21   : > { %p252_p12 = pnand %p507_p10, %p251_p11 }
  0x22   : > { %s763_s4 = sand.u32 (!%p252_p12), 1, %s654_s13   ;;  %p286_p13 = scmp.lt.s32.totalorder (!%p252_p12), %s708_s16, 1 }
  0x23   : > { %255 = sbr.rel (%p252_p12) target bundleno = 282 (0x11a), region = 69  ;;  %s508_s5 = sshll.u32 (!%p252_p12), %s763_s4, 6 }
  0x24   : > { %s260_s6 = scalar_lea.vmem (!%p252_p12), [#allocation2], %s508_s5  ;;  %s509_s10 = sshll.u32 (!%p252_p12), %s763_s4, 3 }
  0x25   : > { %s521_s20 = sshll.u32 (!%p252_p12), %s708_s16, 7  ;;  %s284_s24 = scalar_lea.vmem (!%p252_p12), [#allocation3], %s509_s10 }
  0x26   : > { %s418_s25 = sshll.u32 (!%p252_p12), %s284_s24, 4  ;;  %s779_s28 = scalar_lea.hbm (!%p252_p12), %s825_s3, %s521_s20  ;;  %s781_s25 = int_to_ptr.vmem [resolvable:$true] %s418_s25 }
  0x27   : > { %s405_s29 = scalar_lea.sflag (!%p252_p12), [#allocation4], %s763_s4  ;;  %s602_s30 = scalar_lea.vmem (!%p252_p12), %s781_s25, 128 }
  0x28   : > { %v664_v16 = vmov 0.0   ;;  %vm665_vm0 = vmmov 0   ;;  %v594_v17 = vld [vmem:[%s260_s6 + $0x38] sm:$0xff]   ;;  %v595_v18 = vld [vmem:[%s260_s6 + $0x30] sm:$0xff]   ;;  %v596_v19 = vld [vmem:[%s260_s6 + $0x28] sm:$0xff]   ;;  %s287_s9 = scalar_select %p286_p13, %s708_s16, 1 }
  0x29   : > { %533 = vmatprep.subr.bf16.mxu0 %v664_v16  ;;  %549 = vmatprep.mubr.msk.bf16.mxu0 %vm665_vm0, %v664_v16  ;;  %v597_v20 = vld [vmem:[%s260_s6 + $0x20] sm:$0xff]   ;;  %v598_v21 = vld [vmem:[%s260_s6 + $0x18] sm:$0xff]   ;;  %v599_v22 = vld [vmem:[%s260_s6 + $0x10] sm:$0xff]   ;;  %p603_p0 = scmp.ne.s32.totalorder %s781_s25, %s602_s30  ;;  %s666_s16 = smov [#allocation3]  }
  0x2a   : > { %534 = vmatpush3.bf16.msra.mxu0 %v594_v17  ;;  %v600_v23 = vld [vmem:[%s260_s6 + $0x8] sm:$0xff]   ;;  %v601_v24 = vld [vmem:[%s260_s6] sm:$0xff]   ;;  %s288_s19 = scalar_lea.vmem %s824_s2, %s287_s9  ;;  %s606_s5 = sshll.u32 %s666_s16, 4  ;;  %s607_s5 = int_to_ptr.vmem [resolvable:$false] %s606_s5 }
  0x2b   : > { %535 = vmatprep.subr.bf16.mxu0 %v664_v16  ;;  %v510_v25 = vld [vmem:[%s822_s0 + $0x8] sm:$0xff]  ;;  %v511_v27 = vld [vmem:[%s288_s19] ss:$0 sm:$0xff]  ;;  %p604_p1 = pnand %p603_p0, %p726_p6  ;;  %s608_s6 = scalar_lea.vmem %s607_s5, 256 }
  0x2c   : > { %v291_v26 = vpack.c.bf16 %v510_v25, %v510_v25  ;;  %p609_p3 = scmp.lt.s32.totalorder %s781_s25, %s607_s5  ;;  %p610_p4 = scmp.lt.s32.totalorder %s608_s6, %s602_s30 }
  0x2d   : > { %p605_p2 = pneg %p604_p1 }
  0x2e   : > { %536 = vmatpush3.bf16.msra.mxu0 %v595_v18  ;;  %p611_p5 = por %p610_p4, %p609_p3 }
  0x2f   : > { %537 = vmatprep.subr.bf16.mxu0 %v664_v16 }
  0x30   : > { %p612_p7 = pnand %p611_p5, %p605_p2 }
  0x32   : > { %538 = vmatpush3.bf16.msra.mxu0 %v596_v19 }
  0x33   : > { %539 = vmatprep.subr.bf16.mxu0 %v664_v16 }
  0x36   : > { %540 = vmatpush3.bf16.msra.mxu0 %v597_v20 }
  0x37   : > { %541 = vmatprep.subr.bf16.mxu0 %v664_v16 }
  0x3a   : > { %542 = vmatpush3.bf16.msra.mxu0 %v598_v21 }
  0x3b   : > { %543 = vmatprep.subr.bf16.mxu0 %v664_v16 }
  0x3e   : > { %544 = vmatpush3.bf16.msra.mxu0 %v599_v22 }
  0x3f   : > { %545 = vmatprep.subr.bf16.mxu0 %v664_v16 }
  0x42   : > { %546 = vmatpush3.bf16.msra.mxu0 %v600_v23 }
  0x43   : > { %547 = vmatprep.subr.bf16.mxu0 %v664_v16 }
  0x46   : > { %548 = vmatpush3.bf16.msra.mxu0 %v601_v24 }
  0x49   : > { %550 = vmatmul.mubr.bf16.vlgmr.msra.gmra.mxu0 %v291_v26 }
 0x109   : > { %v397_v28 = vpop.f32.mrf.mxu0 }
 0x10a   : > { %v398_v29 = vadd.f32 %v511_v27, %v397_v28 }
 0x10b   : > { %v551_v30 = vpop.f32.mrf.mxu0 }
 0x10c   : > { %403 = vst [vmem:[%s284_s24] sm:$0xff] %v398_v29 }
 0x10d   : > { %v400_v31 = vpop.f32.mrf.mxu0 }
 0x10e   : > { %615 = shalt.err (!%p612_p7)
}
 0x10f   : > { %s616_s7 = scalar_lea.hbm %s779_s28, 128  ;;  %s620_s9 = scalar_lea.hbm %s825_s3, 256 }
 0x110   : > { %p617_p10 = scmp.ne.s32.totalorder %s779_s28, %s616_s7  ;;  %p621_p13 = scmp.lt.s32.totalorder %s779_s28, %s825_s3 }
 0x111   : > { %p622_p0 = scmp.lt.s32.totalorder %s620_s9, %s616_s7 }
 0x112   : > { %p618_p11 = pnand %p617_p10, %p726_p6 }
 0x113   : > { %p623_p1 = por %p622_p0, %p621_p13 }
 0x114   : > { %p619_p12 = pneg %p618_p11 }
 0x116   : > { %p624_p2 = pnand %p623_p1, %p619_p12 }
 0x118   : > { %627 = shalt.err (!%p624_p2)
}
 0x119   : > { %553 = dma.vmem_to_hbm [thread:$0]  (%p726_p6), %s781_s25, 128, %s779_s28, %s405_s29   ;;  %v552_v32 = vpop.f32.mrf.mxu0 }
 0x11a PF: > { %s430_s17 = sand.u32 1, %s650_s12   ;;  %p556_p3 = pnand %p504_p9, %p730_p8 }
 0x11b   : > { %s431_s19 = scalar_lea.sflag [#allocation4], %s430_s17 }
 0x11c   : > { %p557_p4 = pneg %p556_p3 }
 0x11e   : > { %645 = dma.done.wait (%p557_p4), %s431_s19, 128  }
 0x11f   : > { %647 = vsyncadd (%p557_p4), %s431_s19, 4294967168  ;;  %p13_p5 = scmp.ge.s32.totalorder %s712_s18, 4   ;;  %s828_s12 = smov %s654_s13 }
 0x120   : > { %s829_s13 = smov %s658_s14  ;;  %s830_s14 = smov %s724_s21 }
 0x121   : > { %s831_s15 = smov %s712_s18  ;;  %15 = sbr.rel (!%p13_p5) target bundleno = 3 (0x3), region = 119 }
 0x126   :  { %436 = vsyncpa [#allocation4], 1 }
 0x127   :  { %438 = vsyncpa [#allocation4 + $0x1], 1 }

// kernel: decoder_rnn_forward.2
= control target key start
LH: loop header
LB: loop body
LE: loop exit
PB: predicated region body
PF: predicated region fallthrough
CT: control target
= control target key end

     0   :  { %s1753_s0 = inlined_call_operand.vmem [shape: bf16[8,128], index: 0, kind: input, shape index: {}]   ;;  %s1754_s1 = inlined_call_operand.vmem [shape: f32[2,8,128], index: 1, kind: input, shape index: {}, may-alias: {1,7}]   ;;  %s1755_s2 = inlined_call_operand.hbm [shape: bf16[2,128,384], index: 2, kind: input, shape index: {}]   ;;  %s1756_s3 = inlined_call_operand.hbm [shape: bf16[2,128,384], index: 3, kind: input, shape index: {}]   ;;  %s1757_s4 = inlined_call_operand.vmem [shape: f32[2,1,256], index: 4, kind: input, shape index: {}]   ;;  %s1758_s5 = inlined_call_operand.vmem [shape: f32[2,1,128], index: 5, kind: input, shape index: {}]   ;;  %s1759_s6 = inlined_call_operand.vmem [shape: f32[2,1,128], index: 6, kind: input, shape index: {}]   ;;  %s1760_s7 = inlined_call_operand.vmem [shape: f32[2,8,128], index: 7, kind: output, shape index: {}, may-alias: {1,7}]  }
   0x1   :  { %1762 = sst [smem:[#allocation9_spill]] %s1755_s2 }
   0x2   :  { %1763 = sst [smem:[#allocation10_spill]] %s1756_s3 }
   0x3   :  { %12 = vsyncpa [#allocation4], 0 }
   0x4   :  { %14 = vsyncpa [#allocation4 + $0x1], 0 }
   0x5   :  { %15 = vsyncpa [#allocation6], 0 }
   0x6   :  { %17 = vsyncpa [#allocation6 + $0x1], 0  ;;  %s1471_s24 = smov 0   ;;  %s1473_s25 = smov 0  }
   0x7   :  { %s1475_s26 = smov 0   ;;  %s1477_s27 = smov 0  }
   0x8 LB: > { %s1490_s28 = sadd.s32 4294967295, %s1422_s27   ;;  %s1493_s29 = sadd.s32 1, %s1422_s27   ;;  %s1422_s27 = sphi %s1477_s27, %s1774_s27   ;;  %s1418_s26 = sphi %s1475_s26, %s1773_s26   ;;  %s1414_s25 = sphi %s1473_s25, %s1772_s25   ;;  %s1410_s24 = sphi %s1471_s24, %s1771_s24  }
   0x9   : > { %s74_s30 = ssub.s32 %s1422_s27, %s1493_s29  ;;  %s77_s8 = sadd.s32 1, %s1418_s26 }
   0xa   : > { %p75_p0 = scmp.eq.s32.totalorder %s74_s30, 0  ;;  %p84_p1 = scmp.ne.s32.totalorder %s1418_s26, %s1414_s25 }
   0xb   : > { %p85_p2 = scmp.eq.s32.totalorder %s1422_s27, 0  ;;  %p90_p3 = scmp.ne.s32.totalorder %s1414_s25, %s1410_s24 }
   0xc   : > { %s1503_s9 = scalar_select %p75_p0, %s1418_s26, %s77_s8  }
   0xd   : > { %p86_p4 = por %p85_p2, %p84_p1  ;;  %p91_p5 = scmp.eq.s32.totalorder %s1490_s28, 0 }
   0xe   : > { %p1216_p6 = scmp.lt.s32.totalorder %s1422_s27, 2  ;;  %s1512_s11 = sand.u32 1, %s1418_s26  }
   0xf   : > { %p1507_p7 = por %p91_p5, %p90_p3  ;;  %s1200_s12 = smul.u32 192, %s1512_s11 }
  0x10   : > { %s1201_s13 = smul.u32 3072, %s1422_s27  ;;  %p1516_p8 = pnand %p1216_p6, %p86_p4 }
  0x11   : > { %s1764_s10 = scalar_select %p1507_p7, 1, 0 }
  0x12   : > { %s1766_s2 = sld [smem:[#allocation9_spill]]  ;;  %s258_s18 = scalar_lea.vmem [#allocation3], %s1200_s12 }
  0x13   : > { %s265_s19 = sshll.u32 %s258_s18, 4  ;;  %s255_s20 = scalar_lea.sflag [#allocation4], %s1512_s11  ;;  %s1529_s19 = int_to_ptr.vmem [resolvable:$true] %s265_s19 }
  0x14   : > { %p1330_p11 = pneg %p1516_p8 }
  0x18   : > { %s1525_s17 = scalar_lea.hbm %s1766_s2, %s1201_s13  ;;  %s1333_s24 = scalar_lea.hbm %s1766_s2, 6144 }
  0x19   : > { %s1328_s21 = scalar_lea.hbm %s1525_s17, 3072  ;;  %p1334_p0 = scmp.lt.s32.totalorder %s1525_s17, %s1766_s2 }
  0x1a   : > { %p1329_p10 = scmp.ne.s32.totalorder %s1525_s17, %s1328_s21  ;;  %p1335_p1 = scmp.lt.s32.totalorder %s1333_s24, %s1328_s21 }
  0x1c   : > { %p1331_p12 = pnand %p1330_p11, %p1329_p10  ;;  %p1336_p2 = por %p1335_p1, %p1334_p0 }
  0x1e   : > { %p1332_p13 = pneg %p1331_p12 }
  0x20   : > { %p1337_p3 = pnand %p1336_p2, %p1332_p13 }
  0x22   : > { %1340 = shalt.err (!%p1337_p3)
}
  0x23   : > { %s1341_s15 = scalar_lea.vmem %s1529_s19, 3072  ;;  %s1424_s16 = smov [#allocation3]  }
  0x24   : > { %p1342_p4 = scmp.ne.s32.totalorder %s1529_s19, %s1341_s15  ;;  %s1346_s18 = sshll.u32 %s1424_s16, 4  ;;  %s1347_s18 = int_to_ptr.vmem [resolvable:$false] %s1346_s18 }
  0x25   : > { %s1348_s22 = scalar_lea.vmem %s1347_s18, 6144  ;;  %p1349_p10 = scmp.lt.s32.totalorder %s1529_s19, %s1347_s18 }
  0x26   : > { %p1344_p5 = pnand %p1342_p4, %p1330_p11  ;;  %p1350_p12 = scmp.lt.s32.totalorder %s1348_s22, %s1341_s15 }
  0x28   : > { %p1345_p6 = pneg %p1344_p5  ;;  %p1351_p9 = por %p1350_p12, %p1349_p10 }
  0x2a   : > { %p1352_p0 = pnand %p1351_p9, %p1345_p6 }
  0x2c   : > { %1355 = shalt.err (!%p1352_p0)
}
  0x2d   : > { %s1425_s21 = smov 192   ;;  %s1426_s23 = smov 12  }
  0x2e   : > { %1212 = dma.hbm_to_vmem [thread:$0]  (!%p1516_p8), %s1525_s17, 3072, %s1529_s19, %s255_s20, %s1425_s21, %s1425_s21, %s1426_s23  }
  0x2f   : > { %p313_p9 = scmp.lt.s32.totalorder %s1422_s27, 3  ;;  %s1767_s3 = sld [smem:[#allocation10_spill]] }
  0x30   : > { %p1768_p13 = scmp.ge.s32.totalorder %s1422_s27, 1  ;;  %s279_s16 = scalar_lea.vmem [#allocation5], %s1200_s12 }
  0x31   : > { %s286_s18 = sshll.u32 %s279_s16, 4  ;;  %s276_s17 = scalar_lea.sflag [#allocation6], %s1512_s11  ;;  %s1578_s18 = int_to_ptr.vmem [resolvable:$true] %s286_s18 }
  0x32   : > { %p1572_p1 = pnand %p1768_p13, %p313_p9 }
  0x35   : > { %s1568_s8 = scalar_lea.hbm %s1767_s3, %s1201_s13  ;;  %s1361_s20 = scalar_lea.hbm %s1767_s3, 6144 }
  0x36   : > { %s1356_s19 = scalar_lea.hbm %s1568_s8, 3072  ;;  %p1362_p5 = scmp.lt.s32.totalorder %s1568_s8, %s1767_s3 }
  0x37   : > { %p1357_p2 = scmp.ne.s32.totalorder %s1568_s8, %s1356_s19  ;;  %p1363_p6 = scmp.lt.s32.totalorder %s1361_s20, %s1356_s19 }
  0x39   : > { %p1359_p3 = pnand %p1357_p2, %p1330_p11  ;;  %p1364_p10 = por %p1363_p6, %p1362_p5 }
  0x3b   : > { %p1360_p4 = pneg %p1359_p3 }
  0x3d   : > { %p1365_p12 = pnand %p1364_p10, %p1360_p4 }
  0x3f   : > { %1368 = shalt.err (!%p1365_p12)
}
  0x40   : > { %s1369_s11 = scalar_lea.vmem %s1578_s18, 3072  ;;  %s1427_s12 = smov [#allocation5]  }
  0x41   : > { %p1370_p0 = scmp.ne.s32.totalorder %s1578_s18, %s1369_s11  ;;  %s1374_s30 = sshll.u32 %s1427_s12, 4  ;;  %s1375_s30 = int_to_ptr.vmem [resolvable:$false] %s1374_s30 }
  0x42   : > { %s1376_s16 = scalar_lea.vmem %s1375_s30, 6144  ;;  %p1377_p2 = scmp.lt.s32.totalorder %s1578_s18, %s1375_s30 }
  0x43   : > { %p1372_p9 = pnand %p1370_p0, %p1330_p11  ;;  %p1378_p3 = scmp.lt.s32.totalorder %s1376_s16, %s1369_s11 }
  0x45   : > { %p1373_p13 = pneg %p1372_p9  ;;  %p1379_p7 = por %p1378_p3, %p1377_p2 }
  0x47   : > { %p1380_p5 = pnand %p1379_p7, %p1373_p13 }
  0x49   : > { %1383 = shalt.err (!%p1380_p5)
}
  0x4a   : > { %1215 = dma.hbm_to_vmem [thread:$0]  (!%p1516_p8), %s1568_s8, 3072, %s1578_s18, %s276_s17, %s1425_s21, %s1425_s21, %s1426_s23  }
  0x4b   : > { %317 = sbr.rel (%p1572_p1) target bundleno = 419 (0x1a3), region = 48  ;;  %s319_s19 = sand.u32 (!%p1572_p1), 1, %s1414_s25  }
  0x4c   : > { %s1204_s27 = smul.u32 (!%p1572_p1), 192, %s319_s19  ;;  %s320_s13 = scalar_lea.sflag (!%p1572_p1), [#allocation4], %s319_s19 }
  0x4d   : > { %p1770_p7 = scmp.ne.s32.totalorder (!%p1572_p1), %s1764_s10, 0 }
  0x4e   : > { %s1609_s20 = scalar_lea.vmem (!%p1572_p1), [#allocation3], %s1204_s27 }
  0x50   : > { %1401 = dma.done.wait (%p1770_p7), %s320_s13, 3072  }
  0x51   : > { %1403 = vsyncadd (%p1770_p7), %s320_s13, 4294964224  ;;  %s329_s14 = scalar_lea.sflag [#allocation6], %s319_s19  ;;  %s1615_s22 = scalar_lea.vmem [#allocation5], %s1204_s27 }
  0x52   : > { %1405 = dma.done.wait (%p1770_p7), %s329_s14, 3072  }
  0x53   : > { %1407 = vsyncadd (%p1770_p7), %s329_s14, 4294964224  ;;  %p381_p8 = scmp.lt.s32.totalorder %s1490_s28, 1  ;;  %p1087_p11 = scmp.ne.s32.totalorder %s1490_s28, 0 }
  0x55   : > { %s1623_s21 = scalar_select %p381_p8, %s1490_s28, 1 }
  0x56   : > { %403 = sbr.rel (%p1087_p11) target bundleno = 99 (0x63), region = 60 }
  0x57   : > { %s1084_s23 = sshll.u32 %s1623_s21, 3  ;;  %s1085_s8 = sshll.u32 %s1623_s21, 1 }
  0x58   : > { %s1630_s17 = scalar_lea.vmem %s1754_s1, %s1084_s23  ;;  %s1635_s10 = scalar_lea.vmem %s1757_s4, %s1085_s8 }
  0x59   : > { %s391_s16 = scalar_lea.vmem %s1758_s5, %s1623_s21  ;;  %s394_s13 = scalar_lea.vmem %s1759_s6, %s1623_s21 }
  0x5a   : > { %s1648_s3 = scalar_lea.vmem %s1760_s7, %s1084_s23 }
  0x5b   : > { %v404_v0 = vld [vmem:[%s1753_s0] sm:$0xf] }
  0x5c   : > { %v405_v1 = vunpack.c.l.bf16 %v404_v0 }
  0x5e   : > { %v406_v2 = vmax.f32 %v405_v1, 0.0 }
  0x60   : > { %v407_v3 = vpack.c.bf16 %v406_v2, %v406_v2 }
  0x62   : > { %408 = vst [vmem:[#allocation2] sm:$0xf] %v407_v3 }
  0x63 PF: > { %v1254_v4 = vld [vmem:[%s1609_s20 + $0xac] ss:$12 sps:$4 sm:$0xff]   ;;  %v1256_v5 = vld [vmem:[%s1609_s20 + $0xa8] ss:$12 sps:$4 sm:$0xff]   ;;  %v1428_v6 = vmov 0.0   ;;  %v1429_v7 = vmov 0   ;;  %v898_v1 = vlaneseq }
  0x64   : > { %1160 = vmatprep.subr.bf16.mxu1 %v1428_v6  ;;  %603 = vmatprep.mubr.bf16.mxu0 %v1429_v7  ;;  %v1257_v8 = vld [vmem:[%s1609_s20 + $0x94] ss:$12 sps:$4 sm:$0xff]   ;;  %vm1430_vm0 = vmmov 0   ;;  %v1259_v9 = vld [vmem:[%s1609_s20 + $0x90] ss:$12 sps:$4 sm:$0xff]  }
  0x65   : > { %571 = vmatprep.subr.bf16.mxu0 %v1254_v4  ;;  %1176 = vmatprep.mubr.msk.bf16.mxu1 %vm1430_vm0, %v1428_v6  ;;  %v1260_v10 = vld [vmem:[%s1609_s20 + $0x7c] ss:$12 sps:$4 sm:$0xff]   ;;  %v1262_v11 = vld [vmem:[%s1609_s20 + $0x78] ss:$12 sps:$4 sm:$0xff]   ;;  %v1265_v13 = vld [vmem:[%s1609_s20 + $0x60] ss:$12 sps:$4 sm:$0xff]  }
  0x66   : > { %572 = vmatpush1.bf16.msra.mxu0 %v1256_v5  ;;  %v1263_v12 = vld [vmem:[%s1609_s20 + $0x64] ss:$12 sps:$4 sm:$0xff]   ;;  %v1266_v15 = vld [vmem:[%s1609_s20 + $0x4c] ss:$12 sps:$4 sm:$0xff]   ;;  %v1268_v17 = vld [vmem:[%s1609_s20 + $0x48] ss:$12 sps:$4 sm:$0xff]  }
  0x67   : > { %573 = vmatprep.subr.bf16.mxu0 %v1257_v8  ;;  %v1278_v14 = vld [vmem:[%s1609_s20 + $0xb0] ss:$12 sps:$4 sm:$0xff]   ;;  %v1282_v16 = vld [vmem:[%s1609_s20 + $0x98] ss:$12 sps:$4 sm:$0xff]   ;;  %v1269_v18 = vld [vmem:[%s1609_s20 + $0x34] ss:$12 sps:$4 sm:$0xff]  }
  0x68   : > { %1161 = vmatpush3.bf16.msra.mxu1 %v1278_v14  ;;  %v1286_v19 = vld [vmem:[%s1609_s20 + $0x80] ss:$12 sps:$4 sm:$0xff]   ;;  %v1271_v20 = vld [vmem:[%s1609_s20 + $0x30] ss:$12 sps:$4 sm:$0xff]   ;;  %v1290_v22 = vld [vmem:[%s1609_s20 + $0x68] ss:$12 sps:$4 sm:$0xff]  }
  0x69   : > { %1162 = vmatprep.subr.bf16.mxu1 %v1428_v6  ;;  %v1272_v21 = vld [vmem:[%s1609_s20 + $0x1c] ss:$12 sps:$4 sm:$0xff]   ;;  %v1274_v23 = vld [vmem:[%s1609_s20 + $0x18] ss:$12 sps:$4 sm:$0xff]   ;;  %v1277_v26 = vld [vmem:[%s1609_s20] ss:$12 sps:$4 sm:$0xff]  }
  0x6a   : > { %574 = vmatpush1.bf16.msra.mxu0 %v1259_v9  ;;  %v1275_v24 = vld [vmem:[%s1609_s20 + $0x4] ss:$12 sps:$4 sm:$0xff]   ;;  %v1281_v27 = vld [vmem:[%s1615_s22 + $0xac] ss:$12 sps:$4 sm:$0xff]   ;;  %v409_v29 = vld [vmem:[#allocation2] sm:$0xf] }
  0x6b   : > { %575 = vmatprep.subr.bf16.mxu0 %v1260_v10  ;;  %v1294_v25 = vld [vmem:[%s1609_s20 + $0x50] ss:$12 sps:$4 sm:$0xff]   ;;  %v1298_v28 = vld [vmem:[%s1609_s20 + $0x38] ss:$12 sps:$4 sm:$0xff]   ;;  %v1279_v30 = vld [vmem:[%s1615_s22 + $0xa8] ss:$12 sps:$4 sm:$0xff]  }
  0x6c   : > { %1163 = vmatpush3.bf16.msra.mxu1 %v1282_v16  ;;  %v1285_v31 = vld [vmem:[%s1615_s22 + $0x94] ss:$12 sps:$4 sm:$0xff]   ;;  %v1283_v33 = vld [vmem:[%s1615_s22 + $0x90] ss:$12 sps:$4 sm:$0xff]   ;;  %v1287_v36 = vld [vmem:[%s1615_s22 + $0x78] ss:$12 sps:$4 sm:$0xff]  }
  0x6d   : > { %1164 = vmatprep.subr.bf16.mxu1 %v1428_v6  ;;  %v1302_v32 = vld [vmem:[%s1609_s20 + $0x20] ss:$12 sps:$4 sm:$0xff]   ;;  %v1289_v34 = vld [vmem:[%s1615_s22 + $0x7c] ss:$12 sps:$4 sm:$0xff]   ;;  %v1293_v37 = vld [vmem:[%s1615_s22 + $0x64] ss:$12 sps:$4 sm:$0xff]  }
  0x6e   : > { %576 = vmatpush1.bf16.msra.mxu0 %v1262_v11  ;;  %v1306_v35 = vld [vmem:[%s1609_s20 + $0x8] ss:$12 sps:$4 sm:$0xff]   ;;  %v1310_v38 = vld [vmem:[%s1615_s22 + $0xb0] ss:$12 sps:$4 sm:$0xff]   ;;  %v1291_v39 = vld [vmem:[%s1615_s22 + $0x60] ss:$12 sps:$4 sm:$0xff]  }
  0x6f   : > { %577 = vmatprep.subr.bf16.mxu0 %v1263_v12  ;;  %v1297_v40 = vld [vmem:[%s1615_s22 + $0x4c] ss:$12 sps:$4 sm:$0xff]   ;;  %v1295_v42 = vld [vmem:[%s1615_s22 + $0x48] ss:$12 sps:$4 sm:$0xff]   ;;  %v1299_v45 = vld [vmem:[%s1615_s22 + $0x30] ss:$12 sps:$4 sm:$0xff]  }
  0x70   : > { %1165 = vmatpush3.bf16.msra.mxu1 %v1286_v19  ;;  %v1311_v41 = vld [vmem:[%s1615_s22 + $0x98] ss:$12 sps:$4 sm:$0xff]   ;;  %v1301_v43 = vld [vmem:[%s1615_s22 + $0x34] ss:$12 sps:$4 sm:$0xff]   ;;  %v1305_v46 = vld [vmem:[%s1615_s22 + $0x1c] ss:$12 sps:$4 sm:$0xff]  }
  0x71   : > { %1166 = vmatprep.subr.bf16.mxu1 %v1428_v6  ;;  %v1312_v44 = vld [vmem:[%s1615_s22 + $0x80] ss:$12 sps:$4 sm:$0xff]   ;;  %v1313_v47 = vld [vmem:[%s1615_s22 + $0x68] ss:$12 sps:$4 sm:$0xff]   ;;  %v1303_v48 = vld [vmem:[%s1615_s22 + $0x18] ss:$12 sps:$4 sm:$0xff]  }
  0x72   : > { %578 = vmatpush1.bf16.msra.mxu0 %v1265_v13  ;;  %v1309_v49 = vld [vmem:[%s1615_s22 + $0x4] ss:$12 sps:$4 sm:$0xff]   ;;  %v1307_v51 = vld [vmem:[%s1615_s22] ss:$12 sps:$4 sm:$0xff]   ;;  %v1317_v56 = vld [vmem:[%s1615_s22 + $0x8] ss:$12 sps:$4 sm:$0xff]  }
  0x73   : > { %579 = vmatprep.subr.bf16.mxu0 %v1266_v15  ;;  %v1314_v50 = vld [vmem:[%s1615_s22 + $0x50] ss:$12 sps:$4 sm:$0xff]   ;;  %v1315_v53 = vld [vmem:[%s1615_s22 + $0x38] ss:$12 sps:$4 sm:$0xff]   ;;  %v1316_v55 = vld [vmem:[%s1615_s22 + $0x20] ss:$12 sps:$4 sm:$0xff]  }
  0x74   : > { %1167 = vmatpush3.bf16.msra.mxu1 %v1290_v22  ;;  %v1717_v52 = vld [vmem:[%s1630_s17] sm:$0xff]  ;;  %v899_v2 = vshrl.u32 %v898_v1, 7 }
  0x75   : > { %1168 = vmatprep.subr.bf16.mxu1 %v1428_v6  ;;  %v652_v54 = vpack.c.bf16 %v1717_v52, %v1717_v52  ;;  %v896_v4 = vld [vmem:[%s1635_s10] sm:$0x3] }
  0x76   : > { %580 = vmatpush1.bf16.msra.mxu0 %v1268_v17  ;;  %v900_v3 = vsub.s32 0, %v899_v2  ;;  %v904_v9 = vsub.s32 1, %v899_v2 }
  0x77   : > { %581 = vmatprep.subr.bf16.mxu0 %v1269_v18 }
  0x78   : > { %1169 = vmatpush3.bf16.msra.mxu1 %v1294_v25  ;;  %v901_v5 = vrot.slane %v896_v4, %v900_v3  ;;  %v905_v14 = vrot.slane %v896_v4, %v904_v9  ;;  %v1139_v25 = vld [vmem:[%s394_s13] ss:$0 sm:$0xff] }
  0x79   : > { %1170 = vmatprep.subr.bf16.mxu1 %v1428_v6 }
  0x7a   : > { %582 = vmatpush1.bf16.msra.mxu0 %v1271_v20 }
  0x7b   : > { %583 = vmatprep.subr.bf16.mxu0 %v1272_v21 }
  0x7c   : > { %1171 = vmatpush3.bf16.msra.mxu1 %v1298_v28  ;;  %v1138_v28 = vld [vmem:[%s391_s16] ss:$0 sm:$0xff] }
  0x7d   : > { %1172 = vmatprep.subr.bf16.mxu1 %v1428_v6 }
  0x7e   : > { %584 = vmatpush1.bf16.msra.mxu0 %v1274_v23 }
  0x7f   : > { %585 = vmatprep.subr.bf16.mxu0 %v1275_v24 }
  0x80   : > { %1173 = vmatpush3.bf16.msra.mxu1 %v1302_v32 }
  0x81   : > { %1174 = vmatprep.subr.bf16.mxu1 %v1428_v6 }
  0x82   : > { %586 = vmatpush1.bf16.msra.mxu0 %v1277_v26 }
  0x83   : > { %813 = vmatprep.subr.bf16.mxu0 %v1281_v27 }
  0x84   : > { %1175 = vmatpush3.bf16.msra.mxu1 %v1306_v35 }
  0x85   : > { %604 = vmatmul.mubr.bf16.vlgmr.msra.gmra.mxu0 %v409_v29  ;;  %1180 = vmatprep.subr.bf16.mxu1 %v1428_v6 }
  0x86   : > { %814 = vmatpush1.bf16.msra.mxu0 %v1279_v30  ;;  %845 = vmatprep.mubr.bf16.mxu0 %v1429_v7 }
  0x87   : > { %815 = vmatprep.subr.bf16.mxu0 %v1285_v31  ;;  %1177 = vmatmul.mubr.bf16.vlgmr.msra.gmra.mxu1 %v409_v29 }
  0x88   : > { %1181 = vmatpush3.bf16.msra.mxu1 %v1310_v38  ;;  %1196 = vmatprep.mubr.msk.bf16.mxu1 %vm1430_vm0, %v1428_v6 }
  0x89   : > { %1182 = vmatprep.subr.bf16.mxu1 %v1428_v6 }
  0x8a   : > { %816 = vmatpush1.bf16.msra.mxu0 %v1283_v33 }
  0x8b   : > { %817 = vmatprep.subr.bf16.mxu0 %v1289_v34 }
  0x8c   : > { %1183 = vmatpush3.bf16.msra.mxu1 %v1311_v41 }
  0x8d   : > { %1184 = vmatprep.subr.bf16.mxu1 %v1428_v6 }
  0x8e   : > { %818 = vmatpush1.bf16.msra.mxu0 %v1287_v36 }
  0x8f   : > { %819 = vmatprep.subr.bf16.mxu0 %v1293_v37 }
  0x90   : > { %1185 = vmatpush3.bf16.msra.mxu1 %v1312_v44 }
  0x91   : > { %1186 = vmatprep.subr.bf16.mxu1 %v1428_v6 }
  0x92   : > { %820 = vmatpush1.bf16.msra.mxu0 %v1291_v39 }
  0x93   : > { %821 = vmatprep.subr.bf16.mxu0 %v1297_v40 }
  0x94   : > { %1187 = vmatpush3.bf16.msra.mxu1 %v1313_v47 }
  0x95   : > { %1188 = vmatprep.subr.bf16.mxu1 %v1428_v6 }
  0x96   : > { %822 = vmatpush1.bf16.msra.mxu0 %v1295_v42 }
  0x97   : > { %823 = vmatprep.subr.bf16.mxu0 %v1301_v43 }
  0x98   : > { %1189 = vmatpush3.bf16.msra.mxu1 %v1314_v50 }
  0x99   : > { %1190 = vmatprep.subr.bf16.mxu1 %v1428_v6 }
  0x9a   : > { %824 = vmatpush1.bf16.msra.mxu0 %v1299_v45 }
  0x9b   : > { %825 = vmatprep.subr.bf16.mxu0 %v1305_v46 }
  0x9c   : > { %1191 = vmatpush3.bf16.msra.mxu1 %v1315_v53 }
  0x9d   : > { %1192 = vmatprep.subr.bf16.mxu1 %v1428_v6 }
  0x9e   : > { %826 = vmatpush1.bf16.msra.mxu0 %v1303_v48 }
  0x9f   : > { %827 = vmatprep.subr.bf16.mxu0 %v1309_v49 }
  0xa0   : > { %1193 = vmatpush3.bf16.msra.mxu1 %v1316_v55 }
  0xa1   : > { %1194 = vmatprep.subr.bf16.mxu1 %v1428_v6 }
  0xa2   : > { %828 = vmatpush1.bf16.msra.mxu0 %v1307_v51 }
  0xa4   : > { %1195 = vmatpush3.bf16.msra.mxu1 %v1317_v56 }
  0xa5   : > { %846 = vmatmul.mubr.bf16.vlgmr.msra.gmra.mxu0 %v652_v54 }
  0xa7   : > { %1197 = vmatmul.mubr.bf16.vlgmr.msra.gmra.mxu1 %v652_v54 }
 0x145   : > { %v605_v57 = vpop.f32.mrf.mxu0 }
 0x147   : > { %v607_v58 = vpop.f32.mrf.mxu0  ;;  %v646_v61 = vpop.f32.mrf.mxu1 }
 0x148   : > { %v929_v30 = vadd.f32 %v1138_v28, %v646_v61 }
 0x149   : > { %v609_v59 = vpop.f32.mrf.mxu0  ;;  %v1178_v62 = vpop.f32.mrf.mxu1 }
 0x14b   : > { %v610_v60 = vpop.f32.mrf.mxu0  ;;  %v649_v63 = vpop.f32.mrf.mxu1 }
 0x14d   : > { %v1179_v0 = vpop.f32.mrf.mxu1 }
 0x165   : > { %v847_v7 = vpop.f32.mrf.mxu0 }
 0x166   : > { %v894_v8 = vadd.f32 %v847_v7, %v605_v57 }
 0x167   : > { %v849_v10 = vpop.f32.mrf.mxu0  ;;  %v888_v17 = vpop.f32.mrf.mxu1 }
 0x168   : > { %v908_v6 = vadd.f32 %v901_v5, %v894_v8  ;;  %v895_v13 = vadd.f32 %v849_v10, %v607_v58  ;;  %v937_v27 = vadd.f32 %v1139_v25, %v888_v17 }
 0x169   : > { %v851_v11 = vpop.f32.mrf.mxu0  ;;  %v1198_v18 = vpop.f32.mrf.mxu1 }
 0x16a   : > { %v1136_v12 = vmul.f32 -1.442695, %v908_v6  ;;  %v909_v16 = vadd.f32 %v905_v14, %v895_v13 }
 0x16b   : > { %v852_v15 = vpop.f32.mrf.mxu0  ;;  %v891_v20 = vpop.f32.mrf.mxu1 }
 0x16c   : > { %1318 = vpow2.f32 %v1136_v12  ;;  %v1137_v19 = vmul.f32 -1.442695, %v909_v16 }
 0x16d   : > { %v1199_v21 = vpop.f32.mrf.mxu1 }
 0x16e   : > { %1320 = vpow2.f32 %v1137_v19 }
 0x179   : > { %v1319_v22 = vpop.eup %1318 }
 0x17a   : > { %v916_v23 = vadd.f32 1.0, %v1319_v22 }
 0x17b   : > { %v1321_v24 = vpop.eup %1320 }
 0x17c   : > { %1322 = vrcp.f32 %v916_v23  ;;  %v917_v26 = vadd.f32 1.0, %v1321_v24 }
 0x17e   : > { %1324 = vrcp.f32 %v917_v26 }
 0x189   : > { %v1323_v29 = vpop.eup %1322 }
 0x18a   : > { %v938_v31 = vmul.f32 %v1323_v29, %v937_v27 }
 0x18b   : > { %v1325_v33 = vpop.eup %1324 }
 0x18c   : > { %v939_v32 = vadd.f32 %v938_v31, %v929_v30  ;;  %v941_v34 = vsub.f32 1.0, %v1325_v33  ;;  %v943_v36 = vmul.f32 %v1325_v33, %v1717_v52 }
 0x18e   : > { %1326 = vtanh.f32 %v939_v32 }
 0x19b   : > { %v1327_v35 = vpop.eup %1326 }
 0x19c   : > { %v942_v37 = vmul.f32 %v1327_v35, %v941_v34 }
 0x19e   : > { %v944_v38 = vadd.f32 %v943_v36, %v942_v37 }
 0x1a0   : > { %945 = vst [vmem:[%s1648_s3] sm:$0xff] %v944_v38  ;;  %v946_v39 = vpack.c.bf16 %v944_v38, %v944_v38 }
 0x1a2   : > { %947 = vst [vmem:[#allocation2] sm:$0xf] %v946_v39 }
 0x1a3 PF: > { %p20_p1 = scmp.ge.s32.totalorder %s1493_s29, 4   ;;  %s1771_s24 = smov %s1414_s25 }
 0x1a4   : > { %s1772_s25 = smov %s1418_s26  ;;  %s1773_s26 = smov %s1503_s9 }
 0x1a5   : > { %s1774_s27 = smov %s1493_s29  ;;  %22 = sbr.rel (!%p20_p1) target bundleno = 8 (0x8), region = 117 }
 0x1aa   :  { %967 = vsyncpa [#allocation4], 1 }
 0x1ab   :  { %969 = vsyncpa [#allocation4 + $0x1], 1 }
 0x1ac   :  { %970 = vsyncpa [#allocation6], 1 }
 0x1ad   :  { %972 = vsyncpa [#allocation6 + $0x1], 1 }

</bundles_post_ra>
